<compile_context>
chip_gen: v7x
topology: tpu7x:2x2x1
jax: 0.10.0
libtpu: 0.0.40
codegen_flags: <defaults>
</compile_context>

<pallas_src>
import jax
import jax.numpy as jnp
from jax.experimental import pallas as pl
from jax.experimental.pallas import tpu as pltpu


def mscam_kernel(x_ref, w1_ref, b1_ref, w2_ref, b2e_ref, o_ref):
    """One (Nb, C, T) slab: per-pixel 1x1-conv MLP -> sigmoid gate -> rescale.

    The per-sample global-branch vector is pre-folded into b2e_ref (Nb, C, 1),
    so the kernel is a single pass over x.
    """
    nb = x_ref.shape[0]          # static block dim (small; unrolled)
    w1 = w1_ref[...]             # (Ci, C)
    b1 = b1_ref[...]             # (Ci, 1)
    w2 = w2_ref[...]             # (C, Ci)
    for i in range(nb):
        x = x_ref[i]                                                         # (C, T)
        h = jnp.dot(w1, x, preferred_element_type=jnp.float32) + b1          # (Ci, T)
        h = jnp.maximum(h, 0.0)                                              # ReLU
        z = jnp.dot(w2, h, preferred_element_type=jnp.float32) + b2e_ref[i]  # (C, T)
        # sigmoid(z) == 0.5 * tanh(0.5 * z) + 0.5 : single EUP op, no divide.
        wei = 0.5 * jnp.tanh(0.5 * z) + 0.5
        o_ref[i] = (x * wei).astype(o_ref.dtype)


def _round_up(x, m):
    return ((x + m - 1) // m) * m


def _vmem_capacity_bytes():
    """Per-TensorCore VMEM capacity (v5e/v6e: 128 MiB, v7x: 64 MiB)."""
    try:
        info = pltpu.get_tpu_info()
        for attr in ("vmem_capacity_bytes", "vmem_size_bytes", "vmem_bytes"):
            v = getattr(info, attr, None)
            if v:
                return int(v)
    except Exception:
        pass
    return 64 << 20   # conservative fallback: the smallest per-TC VMEM (v7x)


def _select_tiling(N, C, HW, cap_bytes, dtype_bytes=4):
    """Pick (T, HW_pad, Nb, N_pad, vmem_limit) from the chip's VMEM capacity.

    * T:  spatial (lane) tile, always a multiple of 128 and capped by the
          per-generation budget -> no oversize tiles, no masked partial stores.
    * Nb: samples packed per grid step when the spatial tile is small, so each
          step moves enough bytes to amortize the ~0.35us fixed step overhead.
    """
    # Larger tile budget on v7x (3.2 TB/s HBM -> per-step overhead is ~13% of a
    # 4 MiB step there); 4 MiB on the 128 MiB-VMEM chips (already >94% amortized).
    tile_budget = (6 << 20) if cap_bytes <= (64 << 20) else (4 << 20)

    hw128 = _round_up(HW, 128)
    t_max = max(128, (tile_budget // (C * dtype_bytes)) // 128 * 128)
    if hw128 <= t_max:
        T = hw128
    else:
        # Prefer a 128-multiple divisor of the padded extent; else pad to T.
        T = next((t for t in range(t_max, 127, -128) if hw128 % t == 0), t_max)
    HW_pad = _round_up(HW, T)

    per_sample = C * T * dtype_bytes
    Nb = max(1, min(N, tile_budget // per_sample, 8))
    N_pad = _round_up(N, Nb)

    # VMEM accounting: 2x double-buffered (in + out) tiles, ~2.5x tile of
    # h/xl/wei intermediates, weights (tiny) + compiler-scratch headroom.
    tile_bytes = Nb * C * T * dtype_bytes
    est = 4 * tile_bytes + (5 * tile_bytes) // 2 + (2 << 20)
    vmem_limit = int(min(max(est, 16 << 20), cap_bytes * 3 // 4))
    return T, HW_pad, Nb, N_pad, vmem_limit


def _fold_bn(w, b, gamma, beta, mean, var, eps=1e-5):
    """Fold eval-mode BatchNorm into a preceding 1x1 conv.

    w: (Cin, Cout) matmul weight, b: (Cout,) conv bias.
    Returns folded (w', b') so that BN(conv(x)) == x @ w' + b'.
    """
    scale = gamma / jnp.sqrt(var + eps)           # (Cout,)
    w_f = w * scale[None, :]
    b_f = (b - mean) * scale + beta
    return w_f, b_f


def ms_cam(x_nchw, params):
    """x_nchw: (N, C, H, W) float32. Returns (N, C, H, W)."""
    N, C, H, W = x_nchw.shape
    HW = H * W
    Ci = params["lw1"].shape[1]

    # NCHW -> (N, C, HW): pure reshape, no data movement.
    x = x_nchw.reshape(N, C, HW)

    # Fold eval-mode BN into the 1x1 convs (glue, outside the kernel).
    lw1, lb1 = _fold_bn(params["lw1"], params["lcb1"],
                        params["lg1"], params["lbt1"], params["lm1"], params["lv1"])
    lw2, lb2 = _fold_bn(params["lw2"], params["lcb2"],
                        params["lg2"], params["lbt2"], params["lm2"], params["lv2"])
    gw1, gb1 = _fold_bn(params["gw1"], params["gcb1"],
                        params["gg1"], params["gbt1"], params["gm1"], params["gv1"])
    gw2, gb2 = _fold_bn(params["gw2"], params["gcb2"],
                        params["gg2"], params["gbt2"], params["gm2"], params["gv2"])

    # Global branch (adaptive avg-pool -> MLP), precomputed per sample so the
    # spatially tiled kernel stays single-pass over x, then folded straight
    # into the second conv bias:  wei = sigmoid(W2 h + (b2 + xg)).
    pooled = jnp.mean(x, axis=-1)                              # (N, C)
    g = jnp.maximum(pooled @ gw1 + gb1, 0.0)                   # (N, Ci)
    xg = g @ gw2 + gb2                                         # (N, C)
    b2_eff = (xg + lb2[None, :]).reshape(N, C, 1)              # (N, C, 1)

    # Orient local-branch weights for (C, T) slabs: out = W^T @ x.
    w1 = jnp.transpose(lw1)            # (Ci, C)
    b1 = lb1.reshape(Ci, 1)
    w2 = jnp.transpose(lw2)            # (C, Ci)

    cap = _vmem_capacity_bytes()
    T, HW_pad, Nb, N_pad, vmem_limit = _select_tiling(N, C, HW, cap)

    # Zero-pad awkward shapes (padded rows give out = 0 * sigmoid(...) = 0 and
    # are sliced off below).
    if HW_pad != HW or N_pad != N:
        x = jnp.pad(x, ((0, N_pad - N), (0, 0), (0, HW_pad - HW)))
        b2_eff = jnp.pad(b2_eff, ((0, N_pad - N), (0, 0), (0, 0)))

    grid = (N_pad // Nb, HW_pad // T)

    out = pl.pallas_call(
        mscam_kernel,
        out_shape=jax.ShapeDtypeStruct((N_pad, C, HW_pad), x.dtype),
        grid_spec=pltpu.PrefetchScalarGridSpec(
            num_scalar_prefetch=0,
            grid=grid,
            in_specs=[
                pl.BlockSpec((Nb, C, T), lambda b, s: (b, 0, s)),   # x tiles
                pl.BlockSpec((Ci, C), lambda b, s: (0, 0)),         # local W1^T
                pl.BlockSpec((Ci, 1), lambda b, s: (0, 0)),         # local b1
                pl.BlockSpec((C, Ci), lambda b, s: (0, 0)),         # local W2^T
                pl.BlockSpec((Nb, C, 1), lambda b, s: (b, 0, 0)),   # b2 + xg (per sample)
            ],
            out_specs=pl.BlockSpec((Nb, C, T), lambda b, s: (b, 0, s)),
        ),
        compiler_params=pltpu.CompilerParams(
            # Both axes are independent -> shardable across TensorCores on
            # multi-core chips (v7x); neutral on single-TC v5e/v6e.
            dimension_semantics=("parallel", "parallel"),
            vmem_limit_bytes=vmem_limit,
        ),
    )(x, w1, b1, w2, b2_eff)

    out = out[:N, :, :HW]
    return out.reshape(N, C, H, W)


def init_params(key, channels=64, r=4):
    """Deterministic synthetic parameters matching MS_CAM(channels, r) shapes."""
    Ci = channels // r
    ks = jax.random.split(key, 16)
    f32 = jnp.float32

    def conv_w(k, cin, cout):   # 1x1 conv as (Cin, Cout) matmul weight
        return jax.random.normal(k, (cin, cout), f32) * 0.1

    def bn(kg, kb, km, kv, c):
        gamma = 1.0 + 0.1 * jax.random.normal(kg, (c,), f32)
        beta = 0.1 * jax.random.normal(kb, (c,), f32)
        mean = 0.1 * jax.random.normal(km, (c,), f32)
        var = jnp.abs(jax.random.normal(kv, (c,), f32)) * 0.1 + 1.0
        return gamma, beta, mean, var

    p = {}
    # local branch
    p["lw1"] = conv_w(ks[0], channels, Ci)
    p["lcb1"] = 0.05 * jax.random.normal(ks[1], (Ci,), f32)
    p["lg1"], p["lbt1"], p["lm1"], p["lv1"] = bn(ks[2], ks[3], ks[4], ks[5], Ci)
    p["lw2"] = conv_w(ks[6], Ci, channels)
    p["lcb2"] = 0.05 * jax.random.normal(ks[7], (channels,), f32)
    p["lg2"], p["lbt2"], p["lm2"], p["lv2"] = bn(ks[8], ks[9], ks[10], ks[11], channels)
    # global branch
    kg = jax.random.split(ks[12], 14)
    p["gw1"] = conv_w(kg[0], channels, Ci)
    p["gcb1"] = 0.05 * jax.random.normal(kg[1], (Ci,), f32)
    p["gg1"], p["gbt1"], p["gm1"], p["gv1"] = bn(kg[2], kg[3], kg[4], kg[5], Ci)
    p["gw2"] = conv_w(kg[6], Ci, channels)
    p["gcb2"] = 0.05 * jax.random.normal(kg[7], (channels,), f32)
    p["gg2"], p["gbt2"], p["gm2"], p["gv2"] = bn(kg[8], kg[9], kg[10], kg[11], channels)
    return p


def ms_cam_ref(x_nchw, params):
    """Pure-JAX reference (eval-mode BN) in NCHW for a sanity check."""
    N, C, H, W = x_nchw.shape
    x = x_nchw.reshape(N, C, H * W)
    lw1, lb1 = _fold_bn(params["lw1"], params["lcb1"], params["lg1"], params["lbt1"], params["lm1"], params["lv1"])
    lw2, lb2 = _fold_bn(params["lw2"], params["lcb2"], params["lg2"], params["lbt2"], params["lm2"], params["lv2"])
    gw1, gb1 = _fold_bn(params["gw1"], params["gcb1"], params["gg1"], params["gbt1"], params["gm1"], params["gv1"])
    gw2, gb2 = _fold_bn(params["gw2"], params["gcb2"], params["gg2"], params["gbt2"], params["gm2"], params["gv2"])

    h = jnp.maximum(jnp.einsum('ci,ncs->nis', lw1, x) + lb1[None, :, None], 0.0)
    xl = jnp.einsum('ic,nis->ncs', lw2, h) + lb2[None, :, None]

    pooled = jnp.mean(x, axis=-1)                          # (N, C)
    g = jnp.maximum(pooled @ gw1 + gb1, 0.0)
    xg = (g @ gw2 + gb2)[:, :, None]                       # (N, C, 1)

    out = x * jax.nn.sigmoid(xl + xg)
    return out.reshape(N, C, H, W)


if __name__ == "__main__":
    key = jax.random.PRNGKey(0)
    kx, kp = jax.random.split(key)

    N, C, H, W = 2, 64, 16, 16      # MS_CAM default channels=64, r=4
    x = jax.random.normal(kx, (N, C, H, W), jnp.float32)
    params = init_params(kp, channels=C, r=4)

    out = ms_cam(x, params)
    out = jax.block_until_ready(out)

    ref = ms_cam_ref(x, params)
    assert out.shape == (N, C, H, W)
    assert jnp.allclose(out, ref, atol=1e-5, rtol=1e-5)

    print("KERNEL_OK")
</pallas_src>

<mosaic_0001>
module attributes {stable_mosaic.version = 11 : i64} {
  func.func @mscam_kernel(%arg0: i32, %arg1: i32, %arg2: memref<2x64x256xf32, #tpu.memory_space<vmem>>, %arg3: memref<16x64xf32, #tpu.memory_space<vmem>>, %arg4: memref<16x1xf32, #tpu.memory_space<vmem>>, %arg5: memref<64x16xf32, #tpu.memory_space<vmem>>, %arg6: memref<2x64x1xf32, #tpu.memory_space<vmem>>, %arg7: memref<2x64x256xf32, #tpu.memory_space<vmem>>) attributes {dimension_semantics = [#tpu.dimension_semantics<parallel>, #tpu.dimension_semantics<parallel>], iteration_bounds = array<i64: 1, 1>, scalar_prefetch = 0 : i64, scratch_operands = 0 : i64, tpu.core_type = #tpu.core_type<tc>, window_params = [{transform_indices = @transform_0, window_bounds = array<i64: 2, 64, 256>}, {pipeline_mode = #tpu.pipeline_mode<synchronous>, transform_indices = @transform_1, window_bounds = array<i64: 16, 64>}, {pipeline_mode = #tpu.pipeline_mode<synchronous>, transform_indices = @transform_2, window_bounds = array<i64: 16, 1>}, {pipeline_mode = #tpu.pipeline_mode<synchronous>, transform_indices = @transform_3, window_bounds = array<i64: 64, 16>}, {transform_indices = @transform_4, window_bounds = array<i64: 2, 64, 1>}, {transform_indices = @transform_5, window_bounds = array<i64: 2, 64, 256>}]} {
    %c0 = arith.constant 0 : index
    %c0_0 = arith.constant 0 : index
    %0 = vector.load %arg3[%c0, %c0_0] : memref<16x64xf32, #tpu.memory_space<vmem>>, vector<16x64xf32>
    %c0_1 = arith.constant 0 : index
    %c0_2 = arith.constant 0 : index
    %1 = vector.load %arg4[%c0_1, %c0_2] : memref<16x1xf32, #tpu.memory_space<vmem>>, vector<16x1xf32>
    %c0_3 = arith.constant 0 : index
    %c0_4 = arith.constant 0 : index
    %2 = vector.load %arg5[%c0_3, %c0_4] : memref<64x16xf32, #tpu.memory_space<vmem>>, vector<64x16xf32>
    %c0_5 = arith.constant 0 : index
    %c0_6 = arith.constant 0 : index
    %c0_7 = arith.constant 0 : index
    %3 = vector.load %arg2[%c0_5, %c0_6, %c0_7] : memref<2x64x256xf32, #tpu.memory_space<vmem>>, vector<1x64x256xf32>
    %4 = vector.shape_cast %3 : vector<1x64x256xf32> to vector<64x256xf32>
    %cst = arith.constant dense<0.000000e+00> : vector<16x256xf32>
    %5 = tpu.matmul %0, %4, %cst {dimension_numbers = #tpu.dot_dimension_numbers<[1], [0], [0], [1], [0, 0, 1, 1], [], []>} : vector<16x64xf32>, vector<64x256xf32>, vector<16x256xf32> -> vector<16x256xf32>
    %6 = vector.broadcast %1 : vector<16x1xf32> to vector<16x256xf32>
    %7 = arith.addf %5, %6 : vector<16x256xf32>
    %cst_8 = arith.constant 0.000000e+00 : f32
    %8 = vector.broadcast %cst_8 : f32 to vector<16x256xf32>
    %9 = arith.maximumf %7, %8 : vector<16x256xf32>
    %cst_9 = arith.constant dense<0.000000e+00> : vector<64x256xf32>
    %10 = tpu.matmul %2, %9, %cst_9 {dimension_numbers = #tpu.dot_dimension_numbers<[1], [0], [0], [1], [0, 0, 1, 1], [], []>} : vector<64x16xf32>, vector<16x256xf32>, vector<64x256xf32> -> vector<64x256xf32>
    %c0_10 = arith.constant 0 : index
    %c0_11 = arith.constant 0 : index
    %c0_12 = arith.constant 0 : index
    %11 = vector.load %arg6[%c0_10, %c0_11, %c0_12] : memref<2x64x1xf32, #tpu.memory_space<vmem>>, vector<1x64x1xf32>
    %12 = vector.shape_cast %11 : vector<1x64x1xf32> to vector<64x1xf32>
    %13 = vector.broadcast %12 : vector<64x1xf32> to vector<64x256xf32>
    %14 = arith.addf %10, %13 : vector<64x256xf32>
    %cst_13 = arith.constant 5.000000e-01 : f32
    %15 = vector.broadcast %cst_13 : f32 to vector<64x256xf32>
    %16 = arith.mulf %15, %14 : vector<64x256xf32>
    %17 = math.tanh %16 : vector<64x256xf32>
    %cst_14 = arith.constant 5.000000e-01 : f32
    %18 = vector.broadcast %cst_14 : f32 to vector<64x256xf32>
    %19 = arith.mulf %18, %17 : vector<64x256xf32>
    %cst_15 = arith.constant 5.000000e-01 : f32
    %20 = vector.broadcast %cst_15 : f32 to vector<64x256xf32>
    %21 = arith.addf %19, %20 : vector<64x256xf32>
    %22 = arith.mulf %4, %21 : vector<64x256xf32>
    %c0_16 = arith.constant 0 : index
    %c0_17 = arith.constant 0 : index
    %c0_18 = arith.constant 0 : index
    %23 = vector.load %arg7[%c0_16, %c0_17, %c0_18] : memref<2x64x256xf32, #tpu.memory_space<vmem>>, vector<1x64x256xf32>
    %24 = vector.shape_cast %23 : vector<1x64x256xf32> to vector<64x256xf32>
    %25 = vector.shape_cast %22 : vector<64x256xf32> to vector<1x64x256xf32>
    tpu.vector_store %arg7[%c0_16, %c0_17, %c0_18], %25 {strides = array<i32>} : memref<2x64x256xf32, #tpu.memory_space<vmem>>, vector<1x64x256xf32>,
    %c1 = arith.constant 1 : index
    %c0_19 = arith.constant 0 : index
    %c0_20 = arith.constant 0 : index
    %26 = vector.load %arg2[%c1, %c0_19, %c0_20] : memref<2x64x256xf32, #tpu.memory_space<vmem>>, vector<1x64x256xf32>
    %27 = vector.shape_cast %26 : vector<1x64x256xf32> to vector<64x256xf32>
    %cst_21 = arith.constant dense<0.000000e+00> : vector<16x256xf32>
    %28 = tpu.matmul %0, %27, %cst_21 {dimension_numbers = #tpu.dot_dimension_numbers<[1], [0], [0], [1], [0, 0, 1, 1], [], []>} : vector<16x64xf32>, vector<64x256xf32>, vector<16x256xf32> -> vector<16x256xf32>
    %29 = vector.broadcast %1 : vector<16x1xf32> to vector<16x256xf32>
    %30 = arith.addf %28, %29 : vector<16x256xf32>
    %cst_22 = arith.constant 0.000000e+00 : f32
    %31 = vector.broadcast %cst_22 : f32 to vector<16x256xf32>
    %32 = arith.maximumf %30, %31 : vector<16x256xf32>
    %cst_23 = arith.constant dense<0.000000e+00> : vector<64x256xf32>
    %33 = tpu.matmul %2, %32, %cst_23 {dimension_numbers = #tpu.dot_dimension_numbers<[1], [0], [0], [1], [0, 0, 1, 1], [], []>} : vector<64x16xf32>, vector<16x256xf32>, vector<64x256xf32> -> vector<64x256xf32>
    %c1_24 = arith.constant 1 : index
    %c0_25 = arith.constant 0 : index
    %c0_26 = arith.constant 0 : index
    %34 = vector.load %arg6[%c1_24, %c0_25, %c0_26] : memref<2x64x1xf32, #tpu.memory_space<vmem>>, vector<1x64x1xf32>
    %35 = vector.shape_cast %34 : vector<1x64x1xf32> to vector<64x1xf32>
    %36 = vector.broadcast %35 : vector<64x1xf32> to vector<64x256xf32>
    %37 = arith.addf %33, %36 : vector<64x256xf32>
    %cst_27 = arith.constant 5.000000e-01 : f32
    %38 = vector.broadcast %cst_27 : f32 to vector<64x256xf32>
    %39 = arith.mulf %38, %37 : vector<64x256xf32>
    %40 = math.tanh %39 : vector<64x256xf32>
    %cst_28 = arith.constant 5.000000e-01 : f32
    %41 = vector.broadcast %cst_28 : f32 to vector<64x256xf32>
    %42 = arith.mulf %41, %40 : vector<64x256xf32>
    %cst_29 = arith.constant 5.000000e-01 : f32
    %43 = vector.broadcast %cst_29 : f32 to vector<64x256xf32>
    %44 = arith.addf %42, %43 : vector<64x256xf32>
    %45 = arith.mulf %27, %44 : vector<64x256xf32>
    %c1_30 = arith.constant 1 : index
    %c0_31 = arith.constant 0 : index
    %c0_32 = arith.constant 0 : index
    %46 = vector.load %arg7[%c1_30, %c0_31, %c0_32] : memref<2x64x256xf32, #tpu.memory_space<vmem>>, vector<1x64x256xf32>
    %47 = vector.shape_cast %46 : vector<1x64x256xf32> to vector<64x256xf32>
    %48 = vector.shape_cast %45 : vector<64x256xf32> to vector<1x64x256xf32>
    tpu.vector_store %arg7[%c1_30, %c0_31, %c0_32], %48 {strides = array<i32>} : memref<2x64x256xf32, #tpu.memory_space<vmem>>, vector<1x64x256xf32>,
    return
  }
  func.func @transform_0(%arg0: i32, %arg1: i32) -> (i32, i32, i32) {
    %c0_i32 = arith.constant 0 : i32
    %c0_i32_0 = arith.constant 0 : i32
    return %arg0, %c0_i32, %arg1 : i32, i32, i32
  }
  func.func @transform_1(%arg0: i32, %arg1: i32) -> (i32, i32) {
    %c0_i32 = arith.constant 0 : i32
    %c0_i32_0 = arith.constant 0 : i32
    %c0_i32_1 = arith.constant 0 : i32
    return %c0_i32, %c0_i32_0 : i32, i32
  }
  func.func @transform_2(%arg0: i32, %arg1: i32) -> (i32, i32) {
    %c0_i32 = arith.constant 0 : i32
    %c0_i32_0 = arith.constant 0 : i32
    %c0_i32_1 = arith.constant 0 : i32
    return %c0_i32, %c0_i32_0 : i32, i32
  }
  func.func @transform_3(%arg0: i32, %arg1: i32) -> (i32, i32) {
    %c0_i32 = arith.constant 0 : i32
    %c0_i32_0 = arith.constant 0 : i32
    %c0_i32_1 = arith.constant 0 : i32
    return %c0_i32, %c0_i32_0 : i32, i32
  }
  func.func @transform_4(%arg0: i32, %arg1: i32) -> (i32, i32, i32) {
    %c0_i32 = arith.constant 0 : i32
    %c0_i32_0 = arith.constant 0 : i32
    %c0_i32_1 = arith.constant 0 : i32
    return %arg0, %c0_i32, %c0_i32_0 : i32, i32, i32
  }
  func.func @transform_5(%arg0: i32, %arg1: i32) -> (i32, i32, i32) {
    %c0_i32 = arith.constant 0 : i32
    %c0_i32_0 = arith.constant 0 : i32
    return %arg0, %c0_i32, %arg1 : i32, i32, i32
  }
}

</mosaic_0001>

<bundles_post_ra>
// kernel: tpu_custom_call.1
= control target key start
LH: loop header
LB: loop body
LE: loop exit
PB: predicated region body
PF: predicated region fallthrough
CT: control target
= control target key end

     0   :  { %10 = vsyncpa [#allocation3], 0  ;;  %s1383_s0 = inlined_call_operand.hbm [shape: f32[2,64,256], index: 0, kind: input, shape index: {}]   ;;  %s1384_s1 = inlined_call_operand.vmem [shape: f32[16,64], index: 1, kind: input, shape index: {}]   ;;  %s1385_s2 = inlined_call_operand.vmem [shape: f32[16,1], index: 2, kind: input, shape index: {}]   ;;  %s1386_s3 = inlined_call_operand.vmem [shape: f32[64,16], index: 3, kind: input, shape index: {}]   ;;  %s1387_s4 = inlined_call_operand.vmem [shape: f32[2,64,1], index: 4, kind: input, shape index: {}]   ;;  %s1388_s5 = inlined_call_operand.hbm [shape: f32[2,64,256], index: 5, kind: output, shape index: {}]  }
   0x1   :  { %11 = vsyncpa [#allocation4], 0  ;;  %s1007_s18 = smov [#allocation2]   ;;  %s959_s22 = scalar_lea.hbm %s1383_s0, 4096 }
   0x2   :  { %s17_s19 = sshll.u32 %s1007_s18, 4  ;;  %p960_p0 = scmp.ne.s32.totalorder %s1383_s0, %s959_s22  ;;  %s18_s19 = int_to_ptr.vmem [resolvable:$true] %s17_s19 }
   0x3   :  { %p963_p1 = scmp.lt.u32.totalorder %s959_s22, %s1383_s0 }
   0x5   :  { %p965_p2 = pnand %p963_p1, %p960_p0 }
   0x7   :  { %968 = shalt.err (!%p965_p2)
}
   0x8   :  { %s969_s27 = scalar_lea.vmem %s18_s19, 4096  ;;  %p974_p4 = scmp.lt.s32.totalorder %s18_s19, %s18_s19 }
   0x9   :  { %p970_p3 = scmp.ne.s32.totalorder %s18_s19, %s969_s27  ;;  %p975_p5 = scmp.lt.s32.totalorder %s969_s27, %s969_s27 }
   0xb   :  { %p976_p6 = por %p975_p5, %p974_p4 }
   0xd   :  { %p977_p7 = pnand %p976_p6, %p970_p3 }
   0xf   :  { %980 = shalt.err (!%p977_p7)
}
  0x10   :  { %s1008_s28 = smov 256   ;;  %s1009_s29 = smov 16  }
  0x11   :  { %23 = dma.hbm_to_vmem [thread:$0]  %s1383_s0, 4096, %s18_s19, [#allocation3], %s1008_s28, %s1008_s28, %s1009_s29  }
  0x12   :  { %1003 = dma.done.wait [#allocation3], 4096  }
  0x13   :  { %1004 = vsyncadd [#allocation3], 4294963200  ;;  %v1389_v0 = vmov 0.0   ;;  %v1011_v1 = vmov 0   ;;  %v1060_v2 = vld [vmem:[#allocation2 + $0x8] sm:$0xff]  ;;  %v1062_v3 = vld [vmem:[#allocation2 + $0x18] sm:$0xff] }
  0x14   :  { %144 = vmatprep.mubr.f32.mxu0 %v1389_v0  ;;  %893 = vset.pattern.permute.xlu0 %v1011_v1  ;;  %v1064_v4 = vld [vmem:[#allocation2] sm:$0xff]  ;;  %v845_v5 = vpack.c.bf16 %v1062_v3, %v1060_v2  ;;  %v1068_v6 = vld [vmem:[#allocation2 + $0x10] sm:$0xff]  ;;  %v1070_v7 = vld [vmem:[#allocation2 + $0x28] sm:$0xff]  ;;  %vm73_vm0 = vcmask 523264   ;;  %vm209_vm1 = vcmask 130048  }
  0x15   :  { %322 = vmatprep.mubr.f32.mxu1 %v1389_v0  ;;  %894 = vset.pattern.permute.xlu1 %v1011_v1  ;;  %v1072_v8 = vld [vmem:[#allocation2 + $0x38] sm:$0xff]  ;;  %v847_v9 = vpack.c.bf16 %v1068_v6, %v1064_v4  ;;  %v1078_v11 = vld [vmem:[#allocation2 + $0x20] sm:$0xff]  ;;  %v1080_v12 = vld [vmem:[#allocation2 + $0x30] sm:$0xff] }
  0x16   :  { %v849_v10 = vpack.c.bf16 %v1072_v8, %v1070_v7  ;;  %v1082_v13 = vld [vmem:[#allocation2 + $0x48] sm:$0xff]  ;;  %846 = vmatprep.subr.bf16.mxu0 %v845_v5  ;;  %v1084_v14 = vld [vmem:[#allocation2 + $0x58] sm:$0xff]  ;;  %v851_v15 = vpack.c.bf16 %v1080_v12, %v1078_v11  ;;  %v1090_v17 = vld [vmem:[#allocation2 + $0x40] sm:$0xff] }
  0x17   :  { %848 = vmatpush1.bf16.msra.mxu0 %v847_v9  ;;  %v853_v16 = vpack.c.bf16 %v1084_v14, %v1082_v13  ;;  %v1092_v18 = vld [vmem:[#allocation2 + $0x50] sm:$0xff]  ;;  %v1094_v19 = vld [vmem:[#allocation2 + $0x68] sm:$0xff]  ;;  %v1096_v20 = vld [vmem:[#allocation2 + $0x78] sm:$0xff] }
  0x18   :  { %850 = vmatprep.subr.bf16.mxu0 %v849_v10  ;;  %v37_v21 = vld [vmem:[%s1385_s2] sm:$0xff]  ;;  %v855_v22 = vpack.c.bf16 %v1092_v18, %v1090_v17  ;;  %v38_v23 = vld [vmem:[%s1385_s2 + $0x8] sm:$0xff]  ;;  %v857_v24 = vpack.c.bf16 %v1096_v20, %v1094_v19  ;;  %v1110_v26 = vld [vmem:[#allocation2 + $0x70] sm:$0xff] }
  0x19   :  { %65 = vperm.xlu0 %893, %v37_v21   ;;  %v1108_v25 = vld [vmem:[#allocation2 + $0x60] sm:$0xff]  ;;  %v163_v28 = vld [vmem:[%s1387_s4 + $0x10] sm:$0xff]  ;;  %v1131_v31 = vld [vmem:[%s1384_s1 + $0x8] sm:$0xff] }
  0x1a   :  { %v859_v27 = vpack.c.bf16 %v1110_v26, %v1108_v25  ;;  %v1120_v29 = vld [vmem:[%s1384_s1] sm:$0xff]  ;;  %v167_v32 = vld [vmem:[%s1387_s4 + $0x30] sm:$0xff]  ;;  %v162_v38 = vld [vmem:[%s1387_s4 + $0x8] sm:$0xff] }
  0x1b   :  { %852 = vmatpush1.bf16.msra.mxu0 %v851_v15  ;;  %v165_v30 = vld [vmem:[%s1387_s4 + $0x20] sm:$0xff]  ;;  %v831_v34 = vld [vmem:[%s1387_s4 + $0x50] sm:$0xff]  ;;  %v164_v39 = vld [vmem:[%s1387_s4 + $0x18] sm:$0xff] }
  0x1c   :  { %854 = vmatprep.subr.bf16.mxu0 %v853_v16  ;;  %v829_v33 = vld [vmem:[%s1387_s4 + $0x40] sm:$0xff]  ;;  %v835_v36 = vld [vmem:[%s1387_s4 + $0x70] sm:$0xff]  ;;  %v1168_v52 = vld [vmem:[#allocation2 + $0x88] sm:$0xff] }
  0x1d   :  { %70 = vperm.xlu0 %893, %v38_v23   ;;  %v833_v35 = vld [vmem:[%s1387_s4 + $0x60] sm:$0xff]  ;;  %v1170_v53 = vld [vmem:[#allocation2 + $0x98] sm:$0xff]  ;;  %v1176_v60 = vld [vmem:[#allocation2 + $0x90] sm:$0xff] }
  0x1e   :  { %v161_v37 = vld [vmem:[%s1387_s4] sm:$0xff]  ;;  %v865_v58 = vpack.c.bf16 %v1170_v53, %v1168_v52  ;;  %v1178_v61 = vld [vmem:[#allocation2 + $0xa8] sm:$0xff]  ;;  %v1180_v62 = vld [vmem:[#allocation2 + $0xb8] sm:$0xff] }
  0x1f   :  { %856 = vmatpush1.bf16.msra.mxu0 %v855_v22  ;;  %171 = vperm.xlu1 %894, %v161_v37   ;;  %v1174_v59 = vld [vmem:[#allocation2 + $0x80] sm:$0xff]  ;;  %v869_v9 = vpack.c.bf16 %v1180_v62, %v1178_v61  ;;  %v1198_v15 = vld [vmem:[#allocation2 + $0xb0] sm:$0xff]  ;;  %v1200_v16 = vld [vmem:[#allocation2 + $0xc8] sm:$0xff] }
  0x20   :  { %858 = vmatprep.subr.bf16.mxu0 %v857_v24  ;;  %v1185_v63 = vld [vmem:[%s1386_s3] sm:$0xff]  ;;  %v867_v5 = vpack.c.bf16 %v1176_v60, %v1174_v59  ;;  %v1202_v21 = vld [vmem:[#allocation2 + $0xd8] sm:$0xff]  ;;  %v1212_v22 = vld [vmem:[%s1386_s3 + $0x8] sm:$0xff] }
  0x21   :  { %181 = vperm.xlu0 %893, %v163_v28   ;;  %v1190_v1 = vld [vmem:[%s1386_s3 + $0x20] sm:$0xff]  ;;  %v1217_v23 = vld [vmem:[%s1386_s3 + $0x28] sm:$0xff] }
  0x22   :  { %v1196_v10 = vld [vmem:[#allocation2 + $0xa0] sm:$0xff] }
  0x23   :  { %860 = vmatpush1.bf16.msra.mxu0 %v859_v27  ;;  %176 = vperm.xlu1 %894, %v162_v38   ;;  %v871_v24 = vpack.c.bf16 %v1198_v15, %v1196_v10  ;;  %v873_v27 = vpack.c.bf16 %v1202_v21, %v1200_v16  ;;  %v1224_v28 = vld [vmem:[#allocation2 + $0xc0] sm:$0xff] }
  0x24   :  { %v1252_v38 = vld [vmem:[#allocation2 + $0xe0] sm:$0xff] }
  0x25   :  { %191 = vperm.xlu0 %893, %v165_v30   ;;  %v1226_v30 = vld [vmem:[#allocation2 + $0xd0] sm:$0xff] }
  0x26   :  { %817 = vmatmul.mubr.msk.f32.vlgmr.msra.gmra.mrb[0].mxu0 %vm73_vm0, %v1120_v29 }
  0x27   :  { %150 = vmatprep.mubr.f32.mxu0 %v1389_v0  ;;  %186 = vperm.xlu1 %894, %v164_v39   ;;  %v1254_v39 = vld [vmem:[#allocation2 + $0xf0] sm:$0xff] }
  0x28   :  { %1394 = vst [vmem:[#allocation9_spill] sm:$0xff] %v1254_v39 }
  0x29   :  { %201 = vperm.xlu0 %893, %v167_v32   ;;  %v1228_v32 = vld [vmem:[#allocation2 + $0xe8] sm:$0xff] }
  0x2a   :  { %818 = vmatmul.mubr.msk.f32.gmra.mrb[2].mxu0 %vm73_vm0, %v1131_v31 }
  0x2b   :  { %298 = vmatprep.mubr.f32.mxu0 %v1389_v0 }
  0x2d   :  { %552 = vperm.xlu0 %893, %v829_v33   ;;  %v1230_v33 = vld [vmem:[#allocation2 + $0xf8] sm:$0xff] }
  0x2e   :  { %1393 = vst [vmem:[#allocation8_spill] sm:$0xff] %v1230_v33  ;;  %v877_v37 = vpack.c.bf16 %v1230_v33, %v1228_v32 }
  0x31   :  { %562 = vperm.xlu0 %893, %v831_v34   ;;  %v1240_v34 = vld [vmem:[%s1386_s3 + $0x10] sm:$0xff] }
  0x35   :  { %572 = vperm.xlu0 %893, %v833_v35   ;;  %v1245_v35 = vld [vmem:[%s1386_s3 + $0x30] sm:$0xff] }
  0x39   :  { %582 = vperm.xlu0 %893, %v835_v36   ;;  %v875_v36 = vpack.c.bf16 %v1226_v30, %v1224_v28 }
  0x98   :  { %v1160_v40 = vpop.permute.xlu0 %65 }
  0x9c   :  { %v1163_v44 = vpop.permute.xlu0 %70 }
  0xf9   :  { %v146_v41 = vpop.f32.mrb[0].mxu0 }
  0xfa   :  { %v148_v42 = vpop.f32.mrb[1].mxu0  ;;  %v147_v43 = vadd.f32 %v146_v41, %v1160_v40  ;;  %v1264_v41 = vld [vmem:[%s1386_s3 + $0x18] sm:$0xff] }
  0xfb   :  { %v149_v45 = vadd.f32 %v148_v42, %v1160_v40  ;;  %v879_v42 = vpack.c.bf16 %v1254_v39, %v1252_v38 }
  0xfc   :  { %v157_v50 = vmax.f32 %v147_v43, 0.0  ;;  %v1280_v43 = vld [vmem:[%s1386_s3 + $0x38] sm:$0xff] }
  0xfd   :  { %v152_v46 = vpop.f32.mrb[2].mxu0  ;;  %v158_v54 = vmax.f32 %v149_v45, 0.0  ;;  %v166_v45 = vld [vmem:[%s1387_s4 + $0x28] sm:$0xff] }
  0xfe   :  { %v153_v47 = vadd.f32 %v152_v46, %v1163_v44  ;;  %v154_v48 = vpop.f32.mrb[3].mxu0  ;;  %196 = vperm.xlu1 %894, %v166_v45   ;;  %v832_v46 = vld [vmem:[%s1387_s4 + $0x58] sm:$0xff] }
  0xff   :  { %v155_v49 = vadd.f32 %v154_v48, %v1163_v44  ;;  %v836_v48 = vld [vmem:[%s1387_s4 + $0x78] sm:$0xff] }
 0x100   :  { %v159_v51 = vmax.f32 %v153_v47, 0.0  ;;  %v834_v47 = vld [vmem:[%s1387_s4 + $0x68] sm:$0xff] }
 0x101   :  { %v160_v55 = vmax.f32 %v155_v49, 0.0  ;;  %v182_v49 = vpop.permute.xlu0 %181 }
 0x102   :  { %v863_v56 = vpack.c.bf16 %v159_v51, %v157_v50  ;;  %v172_v50 = vpop.permute.xlu1 %171 }
 0x103   :  { %v861_v57 = vpack.c.bf16 %v160_v55, %v158_v54 }
 0x105   :  { %862 = vmatprep.subr.bf16.mxu0 %v861_v57  ;;  %885 = vmatprep.subr.bf16.mxu1 %v861_v57  ;;  %v192_v51 = vpop.permute.xlu0 %191 }
 0x106   :  { %864 = vmatpush1.bf16.msra.mxu0 %v863_v56  ;;  %886 = vmatpush1.bf16.msra.mxu1 %v863_v56 }
 0x107   :  { %866 = vmatprep.subr.bf16.mxu0 %v865_v58 }
 0x109   :  { %819 = vmatmul.mubr.msk.f32.vlgmr.msra.gmra.mrb[4].mxu0 %vm209_vm1, %v1185_v63  ;;  %823 = vmatmul.mubr.msk.f32.vlgmr.msra.gmra.mrb[0].mxu1 %vm209_vm1, %v1190_v1 }
 0x10a   :  { %868 = vmatpush1.bf16.msra.mxu0 %v867_v5  ;;  %304 = vmatprep.mubr.f32.mxu0 %v1389_v0 }
 0x10b   :  { %328 = vmatprep.mubr.f32.mxu1 %v1389_v0  ;;  %870 = vmatprep.subr.bf16.mxu0 %v869_v9 }
 0x10d   :  { %820 = vmatmul.mubr.msk.f32.gmra.mrb[6].mxu0 %vm209_vm1, %v1212_v22  ;;  %824 = vmatmul.mubr.msk.f32.gmra.mrb[2].mxu1 %vm209_vm1, %v1217_v23 }
 0x10e   :  { %872 = vmatpush1.bf16.msra.mxu0 %v871_v24  ;;  %310 = vmatprep.mubr.f32.mxu0 %v1389_v0 }
 0x10f   :  { %334 = vmatprep.mubr.f32.mxu1 %v1389_v0  ;;  %874 = vmatprep.subr.bf16.mxu0 %v873_v27  ;;  %v177_v27 = vpop.permute.xlu1 %176 }
 0x111   :  { %821 = vmatmul.mubr.msk.f32.gmra.mrb[8].mxu0 %vm209_vm1, %v1240_v34  ;;  %825 = vmatmul.mubr.msk.f32.gmra.mrb[4].mxu1 %vm209_vm1, %v1245_v35 }
 0x112   :  { %876 = vmatpush1.bf16.msra.mxu0 %v875_v36  ;;  %316 = vmatprep.mubr.f32.mxu0 %v1389_v0 }
 0x113   :  { %878 = vmatprep.subr.bf16.mxu0 %v877_v37  ;;  %340 = vmatprep.mubr.f32.mxu1 %v1389_v0 }
 0x115   :  { %822 = vmatmul.mubr.msk.f32.gmra.mrb[10].mxu0 %vm209_vm1, %v1264_v41  ;;  %826 = vmatmul.mubr.msk.f32.gmra.mrb[6].mxu1 %vm209_vm1, %v1280_v43 }
 0x116   :  { %880 = vmatpush1.bf16.msra.mxu0 %v879_v42  ;;  %524 = vmatprep.mubr.f32.mxu0 %v1389_v0 }
 0x117   :  { %654 = vmatprep.mubr.f32.mxu1 %v1389_v0 }
 0x119   :  { %827 = vmatmul.mubr.msk.f32.vlgmr.msra.gmra.mrb[12].mxu0 %vm73_vm0, %v1120_v29  ;;  %v168_v29 = vld [vmem:[%s1387_s4 + $0x38] sm:$0xff] }
 0x11a   :  { %530 = vmatprep.mubr.f32.mxu0 %v1389_v0  ;;  %206 = vperm.xlu1 %894, %v168_v29  }
 0x11d   :  { %828 = vmatmul.mubr.msk.f32.gmra.mrb[14].mxu0 %vm73_vm0, %v1131_v31  ;;  %v830_v31 = vld [vmem:[%s1387_s4 + $0x48] sm:$0xff]  ;;  %s1012_s4 = smov [#allocation5]  }
 0x11e   :  { %557 = vperm.xlu1 %894, %v830_v31   ;;  %s805_s9 = sshll.u32 %s1012_s4, 4  ;;  %s806_s9 = int_to_ptr.vmem [resolvable:$true] %s805_s9 }
 0x11f   :  { %s981_s10 = scalar_lea.vmem %s806_s9, 4096  ;;  %p986_p9 = scmp.lt.s32.totalorder %s806_s9, %s806_s9 }
 0x120   :  { %p982_p8 = scmp.ne.s32.totalorder %s806_s9, %s981_s10  ;;  %p987_p10 = scmp.lt.s32.totalorder %s981_s10, %s981_s10 }
 0x122   :  { %567 = vperm.xlu1 %894, %v832_v46   ;;  %p988_p11 = por %p987_p10, %p986_p9 }
 0x124   :  { %p989_p12 = pnand %p988_p11, %p982_p8 }
 0x126   :  { %577 = vperm.xlu1 %894, %v834_v47  }
 0x12a   :  { %587 = vperm.xlu1 %894, %v836_v48  }
 0x1dc   :  { %v300_v54 = vpop.f32.mrb[4].mxu0  ;;  %v324_v55 = vpop.f32.mrb[0].mxu1 }
 0x1dd   :  { %v301_v56 = vadd.f32 %v300_v54, %v172_v50  ;;  %v325_v57 = vadd.f32 %v324_v55, %v192_v51  ;;  %v302_v58 = vpop.f32.mrb[5].mxu0  ;;  %v326_v5 = vpop.f32.mrb[1].mxu1 }
 0x1de   :  { %v303_v9 = vadd.f32 %v302_v58, %v172_v50  ;;  %v327_v24 = vadd.f32 %v326_v5, %v192_v51  ;;  %v202_v55 = vpop.permute.xlu0 %201 }
 0x1df   :  { %v347_v36 = vmul.f32 0.5, %v301_v56  ;;  %v355_v37 = vmul.f32 0.5, %v325_v57 }
 0x1e0   :  { %v348_v42 = vmul.f32 0.5, %v303_v9  ;;  %v356_v45 = vmul.f32 0.5, %v327_v24  ;;  %v306_v29 = vpop.f32.mrb[6].mxu0  ;;  %v1303_v31 = vpop.f32.mrb[2].mxu1 }
 0x1e1   :  { %895 = vtanh.f32 %v347_v36  ;;  %v307_v46 = vadd.f32 %v306_v29, %v177_v27  ;;  %v308_v47 = vpop.f32.mrb[7].mxu0  ;;  %v1305_v48 = vpop.f32.mrb[3].mxu1 }
 0x1e2   :  { %897 = vtanh.f32 %v355_v37  ;;  %v309_v54 = vadd.f32 %v308_v47, %v177_v27  ;;  %v187_v29 = vpop.permute.xlu1 %186 }
 0x1e3   :  { %899 = vtanh.f32 %v348_v42  ;;  %v349_v0 = vmul.f32 0.5, %v307_v46 }
 0x1e4   :  { %901 = vtanh.f32 %v356_v45  ;;  %v350_v50 = vmul.f32 0.5, %v309_v54  ;;  %v312_v51 = vpop.f32.mrb[8].mxu0  ;;  %v336_v56 = vpop.f32.mrb[4].mxu1 }
 0x1e5   :  { %903 = vtanh.f32 %v349_v0  ;;  %v313_v57 = vadd.f32 %v312_v51, %v182_v49  ;;  %v337_v58 = vadd.f32 %v336_v56, %v202_v55  ;;  %v314_v5 = vpop.f32.mrb[9].mxu0  ;;  %v338_v9 = vpop.f32.mrb[5].mxu1 }
 0x1e6   :  { %905 = vtanh.f32 %v350_v50  ;;  %v315_v24 = vadd.f32 %v314_v5, %v182_v49  ;;  %v339_v36 = vadd.f32 %v338_v9, %v202_v55 }
 0x1e7   :  { %v351_v33 = vmul.f32 0.5, %v313_v57  ;;  %v359_v39 = vmul.f32 0.5, %v337_v58 }
 0x1e8   :  { %v352_v37 = vmul.f32 0.5, %v315_v24  ;;  %v360_v27 = vmul.f32 0.5, %v339_v36  ;;  %v318_v47 = vpop.f32.mrb[10].mxu0 }
 0x1e9   :  { %907 = vtanh.f32 %v351_v33  ;;  %v319_v42 = vadd.f32 %v318_v47, %v187_v29  ;;  %v320_v45 = vpop.f32.mrb[11].mxu0 }
 0x1ea   :  { %909 = vtanh.f32 %v359_v39  ;;  %v321_v46 = vadd.f32 %v320_v45, %v187_v29 }
 0x1eb   :  { %v896_v54 = vpop.eup %895  ;;  %911 = vtanh.f32 %v352_v37  ;;  %v353_v0 = vmul.f32 0.5, %v319_v42 }
 0x1ec   :  { %v898_v51 = vpop.eup %897  ;;  %v379_v56 = vmul.f32 0.5, %v896_v54  ;;  %913 = vtanh.f32 %v360_v27  ;;  %v354_v50 = vmul.f32 0.5, %v321_v46  ;;  %v526_v49 = vpop.f32.mrb[12].mxu0 }
 0x1ed   :  { %v900_v55 = vpop.eup %899  ;;  %v387_v5 = vmul.f32 0.5, %v898_v51  ;;  %915 = vtanh.f32 %v353_v0  ;;  %v528_v57 = vpop.f32.mrb[13].mxu0  ;;  %v527_v29 = vadd.f32 %v526_v49, %v1160_v40 }
 0x1ee   :  { %v902_v58 = vpop.eup %901  ;;  %v395_v9 = vadd.f32 0.5, %v379_v56  ;;  %v380_v24 = vmul.f32 0.5, %v900_v55  ;;  %917 = vtanh.f32 %v354_v50  ;;  %v529_v45 = vadd.f32 %v528_v57, %v1160_v40 }
 0x1ef   :  { %v904_v33 = vpop.eup %903  ;;  %v403_v36 = vadd.f32 0.5, %v387_v5  ;;  %v388_v39 = vmul.f32 0.5, %v902_v58  ;;  %v537_v40 = vmax.f32 %v527_v29, 0.0 }
 0x1f0   :  { %v906_v37 = vpop.eup %905  ;;  %v411_v47 = vmul.f32 %v395_v9, %v1064_v4  ;;  %v396_v42 = vadd.f32 0.5, %v380_v24  ;;  %v381_v27 = vmul.f32 0.5, %v904_v33  ;;  %v532_v46 = vpop.f32.mrb[14].mxu0 }
 0x1f1   :  { %v419_v54 = vmul.f32 %v403_v36, %v1090_v17  ;;  %v404_v0 = vadd.f32 0.5, %v388_v39  ;;  %v382_v51 = vmul.f32 0.5, %v906_v37  ;;  %v533_v56 = vadd.f32 %v532_v46, %v1163_v44  ;;  %v534_v50 = vpop.f32.mrb[15].mxu0 }
 0x1f2   :  { %427 = vst [vmem:[#allocation5] sm:$0xff] %v411_v47  ;;  %v412_v55 = vmul.f32 %v396_v42, %v1060_v2  ;;  %v397_v5 = vadd.f32 0.5, %v381_v27  ;;  %v535_v49 = vadd.f32 %v534_v50, %v1163_v44  ;;  %v538_v36 = vmax.f32 %v529_v45, 0.0 }
 0x1f3   :  { %v908_v58 = vpop.eup %907  ;;  %435 = vst [vmem:[#allocation5 + $0x40] sm:$0xff] %v419_v54  ;;  %v420_v4 = vmul.f32 %v404_v0, %v1082_v13  ;;  %v398_v9 = vadd.f32 0.5, %v382_v51  ;;  %v539_v57 = vmax.f32 %v533_v56, 0.0 }
 0x1f4   :  { %v910_v24 = vpop.eup %909  ;;  %428 = vst [vmem:[#allocation5 + $0x8] sm:$0xff] %v412_v55  ;;  %v413_v17 = vmul.f32 %v397_v5, %v1068_v6  ;;  %v383_v33 = vmul.f32 0.5, %v908_v58  ;;  %v540_v39 = vmax.f32 %v535_v49, 0.0 }
 0x1f5   :  { %v912_v37 = vpop.eup %911  ;;  %436 = vst [vmem:[#allocation5 + $0x48] sm:$0xff] %v420_v4  ;;  %v414_v2 = vmul.f32 %v398_v9, %v1062_v3  ;;  %v391_v47 = vmul.f32 0.5, %v910_v24  ;;  %v883_v44 = vpack.c.bf16 %v539_v57, %v537_v40 }
 0x1f6   :  { %v914_v42 = vpop.eup %913  ;;  %429 = vst [vmem:[#allocation5 + $0x10] sm:$0xff] %v413_v17  ;;  %v399_v27 = vadd.f32 0.5, %v383_v33  ;;  %v384_v13 = vmul.f32 0.5, %v912_v37  ;;  %v881_v46 = vpack.c.bf16 %v540_v39, %v538_v36 }
 0x1f7   :  { %v916_v29 = vpop.eup %915  ;;  %430 = vst [vmem:[#allocation5 + $0x18] sm:$0xff] %v414_v2  ;;  %v407_v54 = vadd.f32 0.5, %v391_v47  ;;  %v392_v0 = vmul.f32 0.5, %v914_v42 }
 0x1f8   :  { %v918_v51 = vpop.eup %917  ;;  %v415_v6 = vmul.f32 %v399_v27, %v1078_v11  ;;  %v400_v45 = vadd.f32 0.5, %v384_v13  ;;  %v385_v56 = vmul.f32 0.5, %v916_v29  ;;  %882 = vmatprep.subr.bf16.mxu1 %v881_v46  ;;  %v553_v27 = vpop.permute.xlu0 %552 }
 0x1f9   :  { %v423_v50 = vmul.f32 %v407_v54, %v1108_v25  ;;  %v408_v3 = vadd.f32 0.5, %v392_v0  ;;  %v386_v55 = vmul.f32 0.5, %v918_v51  ;;  %884 = vmatpush1.bf16.msra.mxu1 %v883_v44  ;;  %v1395_v25 = vmov 0.0  }
 0x1fa   :  { %431 = vst [vmem:[#allocation5 + $0x20] sm:$0xff] %v415_v6  ;;  %v416_v5 = vmul.f32 %v400_v45, %v1070_v7  ;;  %v401_v49 = vadd.f32 0.5, %v385_v56  ;;  %v197_v7 = vpop.permute.xlu1 %196 }
 0x1fb   :  { %439 = vst [vmem:[#allocation5 + $0x60] sm:$0xff] %v423_v50  ;;  %v424_v58 = vmul.f32 %v408_v3, %v1094_v19  ;;  %v402_v4 = vadd.f32 0.5, %v386_v55 }
 0x1fc   :  { %432 = vst [vmem:[#allocation5 + $0x28] sm:$0xff] %v416_v5  ;;  %v417_v9 = vmul.f32 %v401_v49, %v1080_v12  ;;  %837 = vmatmul.mubr.msk.f32.vlgmr.msra.gmra.mrb[8].mxu1 %vm209_vm1, %v1185_v63  ;;  %v333_v12 = vadd.f32 %v1305_v48, %v197_v7 }
 0x1fd   :  { %440 = vst [vmem:[#allocation5 + $0x68] sm:$0xff] %v424_v58  ;;  %v418_v11 = vmul.f32 %v402_v4, %v1072_v8  ;;  %660 = vmatprep.mubr.f32.mxu1 %v1395_v25  ;;  %v331_v8 = vadd.f32 %v1303_v31, %v197_v7  ;;  %v342_v31 = vpop.f32.mrb[6].mxu1 }
 0x1fe   :  { %433 = vst [vmem:[#allocation5 + $0x30] sm:$0xff] %v417_v9  ;;  %v358_v63 = vmul.f32 0.5, %v333_v12  ;;  %v344_v48 = vpop.f32.mrb[7].mxu1 }
 0x1ff   :  { %434 = vst [vmem:[#allocation5 + $0x38] sm:$0xff] %v418_v11  ;;  %v357_v19 = vmul.f32 0.5, %v331_v8 }
 0x200   :  { %838 = vmatmul.mubr.msk.f32.gmra.mrb[10].mxu1 %vm209_vm1, %v1212_v22 }
 0x201   :  { %666 = vmatprep.mubr.f32.mxu1 %v1395_v25  ;;  %919 = vtanh.f32 %v357_v19 }
 0x202   :  { %921 = vtanh.f32 %v358_v63 }
 0x204   :  { %839 = vmatmul.mubr.msk.f32.gmra.mrb[12].mxu1 %vm209_vm1, %v1240_v34 }
 0x205   :  { %672 = vmatprep.mubr.f32.mxu1 %v1395_v25 }
 0x208   :  { %840 = vmatmul.mubr.msk.f32.gmra.mrb[14].mxu1 %vm209_vm1, %v1264_v41 }
 0x209   :  { %678 = vmatprep.mubr.f32.mxu1 %v1395_v25 }
 0x20c   :  { %841 = vmatmul.mubr.msk.f32.gmra.mrb[16].mxu1 %vm209_vm1, %v1190_v1  ;;  %v920_v1 = vpop.eup %919 }
 0x20d   :  { %684 = vmatprep.mubr.f32.mxu1 %v1395_v25  ;;  %v922_v22 = vpop.eup %921 }
 0x20e   :  { %v390_v34 = vmul.f32 0.5, %v922_v22 }
 0x210   :  { %842 = vmatmul.mubr.msk.f32.gmra.mrb[18].mxu1 %vm209_vm1, %v1217_v23  ;;  %v389_v23 = vmul.f32 0.5, %v920_v1 }
 0x211   :  { %690 = vmatprep.mubr.f32.mxu1 %v1395_v25 }
 0x212   :  { %v405_v41 = vadd.f32 0.5, %v389_v23 }
 0x214   :  { %843 = vmatmul.mubr.msk.f32.gmra.mrb[20].mxu1 %vm209_vm1, %v1245_v35  ;;  %v406_v35 = vadd.f32 0.5, %v390_v34  ;;  %v421_v40 = vmul.f32 %v405_v41, %v1092_v18 }
 0x215   :  { %696 = vmatprep.mubr.f32.mxu1 %v1395_v25 }
 0x216   :  { %v422_v57 = vmul.f32 %v406_v35, %v1084_v14  ;;  %437 = vst [vmem:[#allocation5 + $0x50] sm:$0xff] %v421_v40 }
 0x218   :  { %844 = vmatmul.mubr.msk.f32.gmra.mrb[22].mxu1 %vm209_vm1, %v1280_v43  ;;  %438 = vst [vmem:[#allocation5 + $0x58] sm:$0xff] %v422_v57  ;;  %v207_v43 = vpop.permute.xlu1 %206 }
 0x219   :  { %v343_v24 = vadd.f32 %v342_v31, %v207_v43  ;;  %v345_v17 = vadd.f32 %v344_v48, %v207_v43 }
 0x21b   :  { %v361_v33 = vmul.f32 0.5, %v343_v24  ;;  %v362_v36 = vmul.f32 0.5, %v345_v17 }
 0x21c   :  { %v558_v51 = vpop.permute.xlu1 %557 }
 0x21d   :  { %923 = vtanh.f32 %v361_v33 }
 0x21e   :  { %925 = vtanh.f32 %v362_v36 }
 0x220   :  { %v568_v11 = vpop.permute.xlu1 %567 }
 0x227   :  { %v924_v39 = vpop.eup %923 }
 0x228   :  { %v926_v37 = vpop.eup %925  ;;  %v393_v2 = vmul.f32 0.5, %v924_v39 }
 0x229   :  { %v394_v47 = vmul.f32 0.5, %v926_v37  ;;  %v578_v37 = vpop.permute.xlu1 %577 }
 0x22a   :  { %v409_v44 = vadd.f32 0.5, %v393_v2 }
 0x22b   :  { %v410_v42 = vadd.f32 0.5, %v394_v47 }
 0x22c   :  { %v425_v18 = vmul.f32 %v409_v44, %v1110_v26  ;;  %v563_v26 = vpop.permute.xlu0 %562 }
 0x22d   :  { %v426_v14 = vmul.f32 %v410_v42, %v1096_v20 }
 0x22e   :  { %441 = vst [vmem:[#allocation5 + $0x70] sm:$0xff] %v425_v18 }
 0x22f   :  { %442 = vst [vmem:[#allocation5 + $0x78] sm:$0xff] %v426_v14 }
 0x230   :  { %v573_v23 = vpop.permute.xlu0 %572 }
 0x2cf   :  { %v656_v13 = vpop.f32.mrb[8].mxu1 }
 0x2d0   :  { %v657_v46 = vadd.f32 %v656_v13, %v553_v27  ;;  %v658_v29 = vpop.f32.mrb[9].mxu1 }
 0x2d1   :  { %v659_v54 = vadd.f32 %v658_v29, %v553_v27 }
 0x2d2   :  { %v703_v0 = vmul.f32 0.5, %v657_v46 }
 0x2d3   :  { %v704_v6 = vmul.f32 0.5, %v659_v54  ;;  %v662_v45 = vpop.f32.mrb[10].mxu1 }
 0x2d4   :  { %927 = vtanh.f32 %v703_v0  ;;  %v663_v56 = vadd.f32 %v662_v45, %v558_v51  ;;  %v664_v50 = vpop.f32.mrb[11].mxu1 }
 0x2d5   :  { %929 = vtanh.f32 %v704_v6  ;;  %v665_v3 = vadd.f32 %v664_v50, %v558_v51 }
 0x2d6   :  { %v705_v55 = vmul.f32 0.5, %v663_v56 }
 0x2d7   :  { %v706_v5 = vmul.f32 0.5, %v665_v3  ;;  %v668_v20 = vpop.f32.mrb[12].mxu1 }
 0x2d8   :  { %931 = vtanh.f32 %v705_v55  ;;  %v669_v49 = vadd.f32 %v668_v20, %v563_v26  ;;  %v670_v58 = vpop.f32.mrb[13].mxu1 }
 0x2d9   :  { %933 = vtanh.f32 %v706_v5  ;;  %v671_v4 = vadd.f32 %v670_v58, %v563_v26 }
 0x2da   :  { %v707_v9 = vmul.f32 0.5, %v669_v49 }
 0x2db   :  { %v708_v25 = vmul.f32 0.5, %v671_v4  ;;  %v674_v7 = vpop.f32.mrb[14].mxu1 }
 0x2dc   :  { %935 = vtanh.f32 %v707_v9  ;;  %v675_v8 = vadd.f32 %v674_v7, %v568_v11  ;;  %v676_v12 = vpop.f32.mrb[15].mxu1 }
 0x2dd   :  { %937 = vtanh.f32 %v708_v25  ;;  %v677_v19 = vadd.f32 %v676_v12, %v568_v11  ;;  %v588_v11 = vpop.permute.xlu1 %587 }
 0x2de   :  { %v928_v63 = vpop.eup %927  ;;  %v709_v1 = vmul.f32 0.5, %v675_v8 }
 0x2df   :  { %v930_v22 = vpop.eup %929  ;;  %v735_v34 = vmul.f32 0.5, %v928_v63  ;;  %v710_v41 = vmul.f32 0.5, %v677_v19  ;;  %v680_v35 = vpop.f32.mrb[16].mxu1 }
 0x2e0   :  { %v736_v40 = vmul.f32 0.5, %v930_v22  ;;  %939 = vtanh.f32 %v709_v1  ;;  %v681_v57 = vadd.f32 %v680_v35, %v573_v23  ;;  %v682_v43 = vpop.f32.mrb[17].mxu1 }
 0x2e1   :  { %v751_v31 = vadd.f32 0.5, %v735_v34  ;;  %941 = vtanh.f32 %v710_v41  ;;  %v683_v24 = vadd.f32 %v682_v43, %v573_v23 }
 0x2e2   :  { %v932_v48 = vpop.eup %931  ;;  %v752_v17 = vadd.f32 0.5, %v736_v40  ;;  %v711_v33 = vmul.f32 0.5, %v681_v57 }
 0x2e3   :  { %v934_v36 = vpop.eup %933  ;;  %v767_v39 = vmul.f32 %v751_v31, %v1174_v59  ;;  %v737_v2 = vmul.f32 0.5, %v932_v48  ;;  %v712_v47 = vmul.f32 0.5, %v683_v24  ;;  %v686_v44 = vpop.f32.mrb[18].mxu1 }
 0x2e4   :  { %v768_v42 = vmul.f32 %v752_v17, %v1168_v52  ;;  %v738_v18 = vmul.f32 0.5, %v934_v36  ;;  %943 = vtanh.f32 %v711_v33  ;;  %v687_v14 = vadd.f32 %v686_v44, %v578_v37  ;;  %v688_v27 = vpop.f32.mrb[19].mxu1  ;;  %v583_v59 = vpop.permute.xlu0 %582 }
 0x2e5   :  { %784 = vst [vmem:[#allocation5 + $0x80] sm:$0xff] %v767_v39  ;;  %v753_v13 = vadd.f32 0.5, %v737_v2  ;;  %945 = vtanh.f32 %v712_v47  ;;  %v689_v46 = vadd.f32 %v688_v27, %v578_v37 }
 0x2e6   :  { %v936_v29 = vpop.eup %935  ;;  %785 = vst [vmem:[#allocation5 + $0x88] sm:$0xff] %v768_v42  ;;  %v754_v54 = vadd.f32 0.5, %v738_v18  ;;  %v713_v0 = vmul.f32 0.5, %v687_v14 }
 0x2e7   :  { %v938_v51 = vpop.eup %937  ;;  %v769_v6 = vmul.f32 %v753_v13, %v1176_v60  ;;  %v739_v45 = vmul.f32 0.5, %v936_v29  ;;  %v714_v56 = vmul.f32 0.5, %v689_v46  ;;  %v692_v50 = vpop.f32.mrb[20].mxu1 }
 0x2e8   :  { %v770_v52 = vmul.f32 %v754_v54, %v1170_v53  ;;  %v740_v3 = vmul.f32 0.5, %v938_v51  ;;  %947 = vtanh.f32 %v713_v0  ;;  %v693_v55 = vadd.f32 %v692_v50, %v583_v59  ;;  %v694_v26 = vpop.f32.mrb[21].mxu1 }
 0x2e9   :  { %786 = vst [vmem:[#allocation5 + $0x90] sm:$0xff] %v769_v6  ;;  %v755_v5 = vadd.f32 0.5, %v739_v45  ;;  %949 = vtanh.f32 %v714_v56  ;;  %v695_v20 = vadd.f32 %v694_v26, %v583_v59  ;;  %v1397_v6 = vld [vmem:[#allocation8_spill] sm:$0xff] }
 0x2ea   :  { %v940_v49 = vpop.eup %939  ;;  %787 = vst [vmem:[#allocation5 + $0x98] sm:$0xff] %v770_v52  ;;  %v756_v58 = vadd.f32 0.5, %v740_v3  ;;  %v715_v4 = vmul.f32 0.5, %v693_v55 }
 0x2eb   :  { %v942_v9 = vpop.eup %941  ;;  %v771_v60 = vmul.f32 %v755_v5, %v1196_v10  ;;  %v741_v25 = vmul.f32 0.5, %v940_v49  ;;  %v716_v7 = vmul.f32 0.5, %v695_v20  ;;  %v698_v8 = vpop.f32.mrb[22].mxu1 }
 0x2ec   :  { %v772_v53 = vmul.f32 %v756_v58, %v1178_v61  ;;  %v742_v12 = vmul.f32 0.5, %v942_v9  ;;  %951 = vtanh.f32 %v715_v4  ;;  %v699_v19 = vadd.f32 %v698_v8, %v588_v11  ;;  %v700_v63 = vpop.f32.mrb[23].mxu1 }
 0x2ed   :  { %788 = vst [vmem:[#allocation5 + $0xa0] sm:$0xff] %v771_v60  ;;  %v757_v1 = vadd.f32 0.5, %v741_v25  ;;  %953 = vtanh.f32 %v716_v7  ;;  %v701_v22 = vadd.f32 %v700_v63, %v588_v11 }
 0x2ee   :  { %v944_v23 = vpop.eup %943  ;;  %789 = vst [vmem:[#allocation5 + $0xa8] sm:$0xff] %v772_v53  ;;  %v758_v34 = vadd.f32 0.5, %v742_v12  ;;  %v717_v41 = vmul.f32 0.5, %v699_v19 }
 0x2ef   :  { %v946_v35 = vpop.eup %945  ;;  %v773_v10 = vmul.f32 %v757_v1, %v1198_v15  ;;  %v743_v40 = vmul.f32 0.5, %v944_v23  ;;  %v718_v57 = vmul.f32 0.5, %v701_v22 }
 0x2f0   :  { %v774_v43 = vmul.f32 %v758_v34, %v1180_v62  ;;  %v744_v61 = vmul.f32 0.5, %v946_v35  ;;  %955 = vtanh.f32 %v717_v41 }
 0x2f1   :  { %790 = vst [vmem:[#allocation5 + $0xb0] sm:$0xff] %v773_v10  ;;  %v759_v31 = vadd.f32 0.5, %v743_v40  ;;  %957 = vtanh.f32 %v718_v57 }
 0x2f2   :  { %v948_v24 = vpop.eup %947  ;;  %791 = vst [vmem:[#allocation5 + $0xb8] sm:$0xff] %v774_v43  ;;  %v760_v48 = vadd.f32 0.5, %v744_v61 }
 0x2f3   :  { %v950_v17 = vpop.eup %949  ;;  %v775_v33 = vmul.f32 %v759_v31, %v1224_v28  ;;  %v745_v36 = vmul.f32 0.5, %v948_v24 }
 0x2f4   :  { %v776_v39 = vmul.f32 %v760_v48, %v1200_v16  ;;  %v746_v37 = vmul.f32 0.5, %v950_v17 }
 0x2f5   :  { %792 = vst [vmem:[#allocation5 + $0xc0] sm:$0xff] %v775_v33  ;;  %v761_v15 = vadd.f32 0.5, %v745_v36 }
 0x2f6   :  { %v952_v2 = vpop.eup %951  ;;  %793 = vst [vmem:[#allocation5 + $0xc8] sm:$0xff] %v776_v39  ;;  %v762_v62 = vadd.f32 0.5, %v746_v37 }
 0x2f7   :  { %v954_v47 = vpop.eup %953  ;;  %v777_v44 = vmul.f32 %v761_v15, %v1226_v30  ;;  %v747_v42 = vmul.f32 0.5, %v952_v2 }
 0x2f8   :  { %v778_v18 = vmul.f32 %v762_v62, %v1202_v21  ;;  %v748_v14 = vmul.f32 0.5, %v954_v47  ;;  %v1396_v21 = vld [vmem:[#allocation9_spill] sm:$0xff] }
 0x2f9   :  { %794 = vst [vmem:[#allocation5 + $0xd0] sm:$0xff] %v777_v44  ;;  %v763_v27 = vadd.f32 0.5, %v747_v42 }
 0x2fa   :  { %v956_v13 = vpop.eup %955  ;;  %795 = vst [vmem:[#allocation5 + $0xd8] sm:$0xff] %v778_v18  ;;  %v764_v28 = vadd.f32 0.5, %v748_v14 }
 0x2fb   :  { %v958_v46 = vpop.eup %957  ;;  %v779_v16 = vmul.f32 %v763_v27, %v1252_v38  ;;  %v749_v29 = vmul.f32 0.5, %v956_v13 }
 0x2fc   :  { %v780_v54 = vmul.f32 %v764_v28, %v1228_v32  ;;  %v750_v0 = vmul.f32 0.5, %v958_v46 }
 0x2fd   :  { %796 = vst [vmem:[#allocation5 + $0xe0] sm:$0xff] %v779_v16  ;;  %v765_v51 = vadd.f32 0.5, %v749_v29 }
 0x2fe   :  { %797 = vst [vmem:[#allocation5 + $0xe8] sm:$0xff] %v780_v54  ;;  %v766_v30 = vadd.f32 0.5, %v750_v0 }
 0x2ff   :  { %v781_v59 = vmul.f32 %v765_v51, %v1396_v21 }
 0x300   :  { %v782_v45 = vmul.f32 %v766_v30, %v1397_v6 }
 0x301   :  { %798 = vst [vmem:[#allocation5 + $0xf0] sm:$0xff] %v781_v59 }
 0x302   :  { %799 = vst [vmem:[#allocation5 + $0xf8] sm:$0xff] %v782_v45 }
 0x303   :  { %992 = shalt.err (!%p989_p12)
}
 0x304   :  { %s993_s12 = scalar_lea.hbm %s1388_s5, 4096 }
 0x305   :  { %p994_p13 = scmp.ne.s32.totalorder %s1388_s5, %s993_s12  ;;  %p997_p0 = scmp.lt.u32.totalorder %s993_s12, %s1388_s5 }
 0x307   :  { %p999_p1 = pnand %p997_p0, %p994_p13 }
 0x309   :  { %1002 = shalt.err (!%p999_p1)
}
 0x30a   :  { %811 = dma.vmem_to_hbm [thread:$0]  %s806_s9, 4096, %s1388_s5, [#allocation4], %s1008_s28, %s1008_s28, %s1009_s29  }
 0x30b   :  { %1005 = dma.done.wait [#allocation4], 4096  }
 0x30c   :  { %1006 = vsyncadd [#allocation4], 4294963200 }
 0x30d   :  { %815 = vsyncpa [#allocation3], 1 }
 0x30e   :  { %816 = vsyncpa [#allocation4], 1 }

</bundles_post_ra>
